<compile_context>
chip_gen: v7x
topology: tpu7x:2x2x1
jax: 0.10.0
libtpu: 0.0.40
codegen_flags: <defaults>
</compile_context>

<pallas_src>
import jax
import jax.numpy as jnp
from jax.experimental import pallas as pl
from jax.experimental.pallas import tpu as pltpu


def _mlp_kernel(xt_ref, w1t_ref, b1_ref, w2_ref, b2_ref, o_ref):
    # Hidden layer on the MXU, feature-major: (H, D) @ (D, TILE_B) -> (H, TILE_B).
    h = jnp.dot(w1t_ref[...], xt_ref[...], preferred_element_type=jnp.float32)
    # Bias + ReLU on the VPU; b1 is (H, 1) -> lane broadcast.
    h = jnp.maximum(h + b1_ref[...], 0.0)
    # Output layer (H -> 1) on the MXU: (1, H) @ (H, TILE_B) -> (1, TILE_B),
    # lane-dense result.  b2 is a single SMEM scalar.
    y = jnp.dot(w2_ref[...], h, preferred_element_type=jnp.float32) + b2_ref[0]
    o_ref[...] = y.astype(o_ref.dtype)


def _round_up(n, m):
    return ((n + m - 1) // m) * m


def _choose_tile_b(batch):
    """Batch tile (lane axis): multiple of 128, >=2 grid steps when the batch
    allows (so both v7x TensorCores get work), capped at 32768 to keep the
    double-buffered x/out tiles + the (H, TILE_B) hidden temporary comfortably
    under the 32 MiB scoped-VMEM limit (and v7x's 64 MiB physical VMEM)."""
    half = _round_up(pl.cdiv(batch, 2), 128)
    return max(128, min(32768, half))


def quantile_regression_nn_forward(x, w1, b1, w2, b2, *, x_transposed=False):
    """Forward pass of QuantileRegressionNN.

    x : (B, D) float32              (or (D, B) if x_transposed=True)
    w1: (D, H) float32              (= torch nn.Linear(D, H).weight.T)
    b1: (1, H) float32
    w2: (1, H) float32              (= torch nn.Linear(H, 1).weight, native)
    b2: (1, 1) float32
    returns (B, 1) float32
    """
    if x_transposed:
        xt = x
        D, B = x.shape
    else:
        # One extra HBM pass over x; makes the kernel's dominant stream, the
        # hidden temporary and the output fully lane-dense (see header).
        xt = x.T
        B, D = x.shape
    H = w1.shape[1]

    # Tiny parameter re-layouts (a few KiB; negligible).
    w1t = w1.T                      # (H, D)
    b1c = jnp.reshape(b1, (H, 1))   # (H, 1)  -> per-hidden-row bias
    w2r = jnp.reshape(w2, (1, H))   # (1, H)
    b2s = jnp.reshape(b2, (1,))     # (1,)    -> SMEM scalar

    tile_b = _choose_tile_b(B)
    num_tiles = pl.cdiv(B, tile_b)  # no jnp.pad: edge block is read-padded /
                                    # write-masked by Pallas.

    out = pl.pallas_call(
        _mlp_kernel,
        out_shape=jax.ShapeDtypeStruct((1, B), x.dtype),
        grid_spec=pl.GridSpec(
            grid=(num_tiles,),
            in_specs=[
                # x^T: streamed per batch tile, lane-dense, double-buffered.
                pl.BlockSpec((D, tile_b), lambda i: (0, i)),
                # Weights / biases: constant index_map -> VMEM-resident.
                pl.BlockSpec((H, D), lambda i: (0, 0)),
                pl.BlockSpec((H, 1), lambda i: (0, 0)),
                pl.BlockSpec((1, H), lambda i: (0, 0)),
                # b2: single scalar in SMEM (no padded VMEM block).
                pl.BlockSpec(memory_space=pltpu.MemorySpace.SMEM),
            ],
            # Lane-dense output: (1, TILE_B) unmasked full-width stores.
            out_specs=pl.BlockSpec((1, tile_b), lambda i: (0, i)),
        ),
        compiler_params=pltpu.CompilerParams(
            # Batch tiles are independent -> shard across TCs on v7x.
            dimension_semantics=("parallel",),
            # Explicit 32 MiB: above v5e's 16 MiB default, safe on v7x's
            # 64 MiB physical VMEM; our worst-case footprint is ~24 MiB.
            vmem_limit_bytes=32 * 1024 * 1024,
        ),
    )(xt, w1t, b1c, w2r, b2s)

    # (1, B) row-major == (B, 1) row-major: pure metadata reshape.
    return jnp.reshape(out, (B, 1))


def _init_params(key, input_dim, hidden_dim):
    """Deterministic init mirroring torch.nn.Linear default (U(+/- 1/sqrt(fan_in)))."""
    k1, k2, k3, k4 = jax.random.split(key, 4)
    bound1 = 1.0 / jnp.sqrt(jnp.float32(input_dim))
    bound2 = 1.0 / jnp.sqrt(jnp.float32(hidden_dim))
    w1 = jax.random.uniform(k1, (input_dim, hidden_dim), jnp.float32,
                            minval=-bound1, maxval=bound1)
    b1 = jax.random.uniform(k2, (1, hidden_dim), jnp.float32,
                            minval=-bound1, maxval=bound1)
    w2 = jax.random.uniform(k3, (1, hidden_dim), jnp.float32,
                            minval=-bound2, maxval=bound2)
    b2 = jax.random.uniform(k4, (1, 1), jnp.float32,
                            minval=-bound2, maxval=bound2)
    return w1, b1, w2, b2


if __name__ == "__main__":
    key = jax.random.PRNGKey(0)
    kx, kp = jax.random.split(key)

    batch = 8
    input_dim = 16
    hidden_dim = 64  # module default

    x = jax.random.normal(kx, (batch, input_dim), jnp.float32)
    w1, b1, w2, b2 = _init_params(kp, input_dim, hidden_dim)

    out = quantile_regression_nn_forward(x, w1, b1, w2, b2)
    out = jax.block_until_ready(out)

    # Pure-JAX reference check (same math as the PyTorch module).
    ref = jnp.maximum(x @ w1 + b1, 0.0) @ w2.T + b2
    assert out.shape == (batch, 1)
    assert jnp.allclose(out, ref, atol=1e-5, rtol=1e-5), "mismatch vs reference"

    print("KERNEL_OK")
</pallas_src>

<mosaic_0001>
module attributes {stable_mosaic.version = 11 : i64} {
  func.func @_mlp_kernel(%arg0: i32, %arg1: memref<16x128xf32, #tpu.memory_space<vmem>>, %arg2: memref<64x16xf32, #tpu.memory_space<vmem>>, %arg3: memref<64x1xf32, #tpu.memory_space<vmem>>, %arg4: memref<1x64xf32, #tpu.memory_space<vmem>>, %arg5: memref<1xf32, #tpu.memory_space<smem>>, %arg6: memref<1x128xf32, #tpu.memory_space<vmem>>) attributes {dimension_semantics = [#tpu.dimension_semantics<parallel>], iteration_bounds = array<i64: 1>, scalar_prefetch = 0 : i64, scratch_operands = 0 : i64, tpu.core_type = #tpu.core_type<tc>, window_params = [{transform_indices = @transform_0, window_bounds = array<i64: 16, 128>}, {pipeline_mode = #tpu.pipeline_mode<synchronous>, transform_indices = @transform_1, window_bounds = array<i64: 64, 16>}, {pipeline_mode = #tpu.pipeline_mode<synchronous>, transform_indices = @transform_2, window_bounds = array<i64: 64, 1>}, {pipeline_mode = #tpu.pipeline_mode<synchronous>, transform_indices = @transform_3, window_bounds = array<i64: 1, 64>}, {transform_indices = @transform_4, window_bounds = array<i64: 1>}, {transform_indices = @transform_5, window_bounds = array<i64: 1, 128>}]} {
    %c0 = arith.constant 0 : index
    %c0_0 = arith.constant 0 : index
    %0 = vector.load %arg2[%c0, %c0_0] : memref<64x16xf32, #tpu.memory_space<vmem>>, vector<64x16xf32>
    %c0_1 = arith.constant 0 : index
    %c0_2 = arith.constant 0 : index
    %1 = vector.load %arg1[%c0_1, %c0_2] : memref<16x128xf32, #tpu.memory_space<vmem>>, vector<16x128xf32>
    %cst = arith.constant dense<0.000000e+00> : vector<64x128xf32>
    %2 = tpu.matmul %0, %1, %cst {dimension_numbers = #tpu.dot_dimension_numbers<[1], [0], [0], [1], [0, 0, 1, 1], [], []>} : vector<64x16xf32>, vector<16x128xf32>, vector<64x128xf32> -> vector<64x128xf32>
    %c0_3 = arith.constant 0 : index
    %c0_4 = arith.constant 0 : index
    %3 = vector.load %arg3[%c0_3, %c0_4] : memref<64x1xf32, #tpu.memory_space<vmem>>, vector<64x1xf32>
    %4 = vector.broadcast %3 : vector<64x1xf32> to vector<64x128xf32>
    %5 = arith.addf %2, %4 : vector<64x128xf32>
    %cst_5 = arith.constant 0.000000e+00 : f32
    %6 = vector.broadcast %cst_5 : f32 to vector<64x128xf32>
    %7 = arith.maximumf %5, %6 : vector<64x128xf32>
    %c0_6 = arith.constant 0 : index
    %c0_7 = arith.constant 0 : index
    %8 = vector.load %arg4[%c0_6, %c0_7] : memref<1x64xf32, #tpu.memory_space<vmem>>, vector<1x64xf32>
    %cst_8 = arith.constant dense<0.000000e+00> : vector<1x128xf32>
    %9 = tpu.matmul %8, %7, %cst_8 {dimension_numbers = #tpu.dot_dimension_numbers<[1], [0], [0], [1], [0, 0, 1, 1], [], []>} : vector<1x64xf32>, vector<64x128xf32>, vector<1x128xf32> -> vector<1x128xf32>
    %c0_9 = arith.constant 0 : index
    %10 = memref.load %arg5[%c0_9] : memref<1xf32, #tpu.memory_space<smem>>
    %11 = vector.broadcast %10 : f32 to vector<1x128xf32>
    %12 = arith.addf %9, %11 : vector<1x128xf32>
    %c0_10 = arith.constant 0 : index
    %c0_11 = arith.constant 0 : index
    %13 = vector.load %arg6[%c0_10, %c0_11] : memref<1x128xf32, #tpu.memory_space<vmem>>, vector<1x128xf32>
    tpu.vector_store %arg6[%c0_10, %c0_11], %12 {strides = array<i32>} : memref<1x128xf32, #tpu.memory_space<vmem>>, vector<1x128xf32>,
    return
  }
  func.func @transform_0(%arg0: i32) -> (i32, i32) {
    %c0_i32 = arith.constant 0 : i32
    %c0_i32_0 = arith.constant 0 : i32
    return %c0_i32, %arg0 : i32, i32
  }
  func.func @transform_1(%arg0: i32) -> (i32, i32) {
    %c0_i32 = arith.constant 0 : i32
    %c0_i32_0 = arith.constant 0 : i32
    %c0_i32_1 = arith.constant 0 : i32
    return %c0_i32, %c0_i32_0 : i32, i32
  }
  func.func @transform_2(%arg0: i32) -> (i32, i32) {
    %c0_i32 = arith.constant 0 : i32
    %c0_i32_0 = arith.constant 0 : i32
    %c0_i32_1 = arith.constant 0 : i32
    return %c0_i32, %c0_i32_0 : i32, i32
  }
  func.func @transform_3(%arg0: i32) -> (i32, i32) {
    %c0_i32 = arith.constant 0 : i32
    %c0_i32_0 = arith.constant 0 : i32
    %c0_i32_1 = arith.constant 0 : i32
    return %c0_i32, %c0_i32_0 : i32, i32
  }
  func.func @transform_4(%arg0: i32) -> i32 {
    %c0_i32 = arith.constant 0 : i32
    %c0_i32_0 = arith.constant 0 : i32
    return %c0_i32 : i32
  }
  func.func @transform_5(%arg0: i32) -> (i32, i32) {
    %c0_i32 = arith.constant 0 : i32
    %c0_i32_0 = arith.constant 0 : i32
    return %c0_i32, %arg0 : i32, i32
  }
}

</mosaic_0001>

<bundles_post_ra>
// kernel: tpu_custom_call.1
= control target key start
LH: loop header
LB: loop body
LE: loop exit
PB: predicated region body
PF: predicated region fallthrough
CT: control target
= control target key end

     0   :  { %vm80_vm0 = vcmask 130048   ;;  %v420_v4 = vmov 0   ;;  %s535_s0 = inlined_call_operand.vmem [shape: f32[16,8], index: 0, kind: input, shape index: {}]   ;;  %s536_s1 = inlined_call_operand.vmem [shape: f32[64,16], index: 1, kind: input, shape index: {}]   ;;  %s537_s2 = inlined_call_operand.vmem [shape: f32[64,1], index: 2, kind: input, shape index: {}]   ;;  %s538_s3 = inlined_call_operand.vmem [shape: f32[1,64], index: 3, kind: input, shape index: {}]   ;;  %s539_s4 = inlined_call_operand.<no memory space> [shape: f32[1], index: 4, kind: input, shape index: {}]   ;;  %s540_s5 = inlined_call_operand.hbm [shape: f32[1,8], index: 5, kind: output, shape index: {}]  }
   0x1   :  { %v30_v0 = vld [vmem:[%s535_s0] sm:$0xff]  ;;  %v31_v1 = vld [vmem:[%s535_s0 + $0x8] sm:$0xff]  ;;  %394 = vset.pattern.permute.xlu0 %v420_v4  ;;  %395 = vset.pattern.permute.xlu1 %v420_v4  ;;  %v34_v6 = vld [vmem:[%s537_s2 + $0x10] sm:$0xff] }
   0x2   :  { %v22_v2 = vld [vmem:[%s536_s1] sm:$0xff]  ;;  %v373_v3 = vpack.c.bf16 %v31_v1, %v30_v0  ;;  %v23_v7 = vld [vmem:[%s536_s1 + $0x8] sm:$0xff]  ;;  %v24_v8 = vld [vmem:[%s536_s1 + $0x10] sm:$0xff]  ;;  %52 = vperm.xlu1 %395, %v34_v6  }
   0x3   :  { %342 = vmatprep.mubr.msk.f32.mxu0 %vm80_vm0, %v22_v2  ;;  %v32_v5 = vld [vmem:[%s537_s2] sm:$0xff]  ;;  %v33_v9 = vld [vmem:[%s537_s2 + $0x8] sm:$0xff]  ;;  %v35_v10 = vld [vmem:[%s537_s2 + $0x18] sm:$0xff] }
   0x4   :  { %374 = vmatprep.subr.bf16.mxu0 %v373_v3  ;;  %42 = vperm.xlu0 %394, %v32_v5  }
   0x5   :  { %376 = vmatpush3.bf16.msra.mxu0 %v373_v3 }
   0x6   :  { %11 = vsyncpa [#allocation4], 0  ;;  %v25_v11 = vld [vmem:[%s536_s1 + $0x18] sm:$0xff]  ;;  %v26_v12 = vld [vmem:[%s536_s1 + $0x20] sm:$0xff]  ;;  %57 = vperm.xlu1 %395, %v35_v10   ;;  %v421_v20 = vmov 0.0|0.0   ;;  %vm422_vm1 = vmmov 0   ;;  %v220_v59 = vstv %s539_s4 }
   0x7   :  { %v36_v13 = vld [vmem:[%s537_s2 + $0x20] sm:$0xff]  ;;  %v37_v14 = vld [vmem:[%s537_s2 + $0x28] sm:$0xff]  ;;  %v28_v16 = vld [vmem:[%s536_s1 + $0x30] sm:$0xff]  ;;  %377 = vmatprep.subr.bf16.mxu1 %v421_v20  ;;  %v423_v21 = vmov 0.0   ;;  %vm221_vm2 = vcmask 523264   ;;  %s424_s29 = smov [#allocation3]  }
   0x8   :  { %343 = vmatmul.mubr.msk.f32.vlgmr.msra.gmra.mrb[0].mxu0 %vm80_vm0, %v23_v7  ;;  %47 = vperm.xlu0 %394, %v33_v9   ;;  %v27_v15 = vld [vmem:[%s536_s1 + $0x28] sm:$0xff]  ;;  %v38_v17 = vld [vmem:[%s537_s2 + $0x30] sm:$0xff]  ;;  %v39_v18 = vld [vmem:[%s537_s2 + $0x38] sm:$0xff]  ;;  %s302_s30 = sshll.u32 %s424_s29, 4  ;;  %s303_s30 = int_to_ptr.vmem [resolvable:$true] %s302_s30 }
   0x9   :  { %345 = vmatprep.mubr.msk.f32.mxu0 %vm80_vm0, %v24_v8  ;;  %v29_v19 = vld [vmem:[%s536_s1 + $0x38] sm:$0xff]  ;;  %370 = vmatprep.mubr.msk.f32.mxu1 %vm422_vm1, %v423_v21  ;;  %v218_v58 = vld [vmem:[%s538_s3] sm:$0x1]  ;;  %s396_s6 = scalar_lea.vmem %s303_s30, 16  ;;  %s400_s7 = scalar_lea.vmem %s303_s30, 32 }
   0xa   :  { %67 = vperm.xlu1 %395, %v37_v14   ;;  %p397_p0 = scmp.ne.s32.totalorder %s303_s30, %s396_s6  ;;  %p401_p1 = scmp.lt.s32.totalorder %s303_s30, %s303_s30 }
   0xb   :  { %p402_p2 = scmp.lt.s32.totalorder %s400_s7, %s396_s6 }
   0xc   :  { %346 = vmatmul.mubr.msk.f32.gmra.mrb[2].mxu0 %vm80_vm0, %v25_v11  ;;  %62 = vperm.xlu0 %394, %v36_v13  }
   0xd   :  { %348 = vmatprep.mubr.msk.f32.mxu0 %vm80_vm0, %v26_v12  ;;  %p403_p3 = por %p402_p2, %p401_p1 }
   0xe   :  { %77 = vperm.xlu1 %395, %v39_v18  }
   0xf   :  { %p404_p4 = pnand %p403_p3, %p397_p0 }
  0x10   :  { %349 = vmatmul.mubr.msk.f32.gmra.mrb[4].mxu0 %vm80_vm0, %v27_v15  ;;  %72 = vperm.xlu0 %394, %v38_v17  }
  0x11   :  { %351 = vmatprep.mubr.msk.f32.mxu0 %vm80_vm0, %v28_v16 }
  0x14   :  { %352 = vmatmul.mubr.msk.f32.gmra.mrb[6].mxu0 %vm80_vm0, %v29_v19 }
  0x81   :  { %v53_v23 = vpop.permute.xlu1 %52 }
  0x83   :  { %v43_v22 = vpop.permute.xlu0 %42 }
  0x85   :  { %v58_v25 = vpop.permute.xlu1 %57 }
  0x87   :  { %v48_v24 = vpop.permute.xlu0 %47 }
  0x89   :  { %v68_v35 = vpop.permute.xlu1 %67 }
  0x8b   :  { %v63_v38 = vpop.permute.xlu0 %62 }
  0x8d   :  { %v78_v47 = vpop.permute.xlu1 %77 }
  0x8f   :  { %v73_v50 = vpop.permute.xlu0 %72 }
  0xdb   :  { %v344_v26 = vpop.f32.mrb[0].mxu0 }
  0xdc   :  { %v177_v27 = vadd.f32 %v344_v26, %v48_v24  ;;  %v171_v28 = vpop.f32.mrb[1].mxu0 }
  0xdd   :  { %v172_v29 = vadd.f32 %v171_v28, %v43_v22 }
  0xde   :  { %v211_v30 = vmax.f32 %v177_v27, 0.0 }
  0xdf   :  { %v210_v31 = vmax.f32 %v172_v29, 0.0  ;;  %v347_v32 = vpop.f32.mrb[2].mxu0 }
  0xe0   :  { %v187_v33 = vadd.f32 %v347_v32, %v58_v25  ;;  %v181_v34 = vpop.f32.mrb[3].mxu0 }
  0xe1   :  { %v182_v36 = vadd.f32 %v181_v34, %v53_v23  ;;  %v378_v37 = vpack.c.bf16 %v211_v30, %v210_v31 }
  0xe2   :  { %v213_v39 = vmax.f32 %v187_v33, 0.0 }
  0xe3   :  { %v212_v40 = vmax.f32 %v182_v36, 0.0  ;;  %v350_v41 = vpop.f32.mrb[4].mxu0  ;;  %379 = vmatpush3.bf16.msra.mxu1 %v378_v37 }
  0xe4   :  { %v197_v42 = vadd.f32 %v350_v41, %v68_v35  ;;  %v191_v43 = vpop.f32.mrb[5].mxu0  ;;  %380 = vmatprep.subr.bf16.mxu1 %v421_v20 }
  0xe5   :  { %v381_v44 = vpack.c.bf16 %v213_v39, %v212_v40  ;;  %v192_v45 = vadd.f32 %v191_v43, %v63_v38 }
  0xe6   :  { %v215_v46 = vmax.f32 %v197_v42, 0.0 }
  0xe7   :  { %v214_v48 = vmax.f32 %v192_v45, 0.0  ;;  %v353_v49 = vpop.f32.mrb[6].mxu0  ;;  %382 = vmatpush3.bf16.msra.mxu1 %v381_v44 }
  0xe8   :  { %v207_v51 = vadd.f32 %v353_v49, %v78_v47  ;;  %v201_v52 = vpop.f32.mrb[7].mxu0  ;;  %383 = vmatprep.subr.bf16.mxu1 %v421_v20 }
  0xe9   :  { %v384_v53 = vpack.c.bf16 %v215_v46, %v214_v48  ;;  %v202_v54 = vadd.f32 %v201_v52, %v73_v50 }
  0xea   :  { %v217_v55 = vmax.f32 %v207_v51, 0.0 }
  0xeb   :  { %v216_v56 = vmax.f32 %v202_v54, 0.0  ;;  %385 = vmatpush3.bf16.msra.mxu1 %v384_v53 }
  0xec   :  { %386 = vmatprep.subr.bf16.mxu1 %v421_v20 }
  0xed   :  { %v387_v57 = vpack.c.bf16 %v217_v55, %v216_v56 }
  0xef   :  { %388 = vmatpush3.bf16.msra.mxu1 %v387_v57 }
  0xf2   :  { %371 = vmatmul.mubr.msk.f32.vlgmr.msra.gmra.mrb[0].mxu1 %vm221_vm2, %v218_v58 }
 0x1c5   :  { %v291_v60 = vpop.f32.mrb[0].mxu1 }
 0x1c6   :  { %v292_v61 = vadd.f32 %v291_v60, %v220_v59  ;;  %v372_v62 = vpop.f32.mrb[1].mxu1 }
 0x1c8   :  { %295 = vst [vmem:[#allocation3] sm:$0x1] %v292_v61 }
 0x1c9   :  { %407 = shalt.err (!%p404_p4)
}
 0x1ca   :  { %s408_s9 = scalar_lea.hbm %s540_s5, 16 }
 0x1cb   :  { %p409_p5 = scmp.ne.s32.totalorder %s540_s5, %s408_s9  ;;  %p412_p6 = scmp.lt.u32.totalorder %s408_s9, %s540_s5 }
 0x1cd   :  { %p414_p7 = pnand %p412_p6, %p409_p5 }
 0x1cf   :  { %417 = shalt.err (!%p414_p7)
}
 0x1d0   :  { %305 = dma.vmem_to_hbm [thread:$0]  %s303_s30, 16, %s540_s5, [#allocation4]  }
 0x1d1   :  { %418 = dma.done.wait [#allocation4], 16  }
 0x1d2   :  { %419 = vsyncadd [#allocation4], 4294967280 }
 0x1d3   :  { %309 = vsyncpa [#allocation4], 1 }

</bundles_post_ra>
